<compile_context>
chip_gen: v6e
topology: v6e:2x2x1
jax: 0.10.0
libtpu: 0.0.40
codegen_flags: <defaults>
</compile_context>

<pallas_src>
import jax
import jax.numpy as jnp
from jax.experimental import pallas as pl
from jax.experimental.pallas import tpu as pltpu

_LANES = 128


def _split3_kernel(x0_ref, x1_ref, x2_ref, s0_ref, s1_ref, s2_ref):
    # Each ref block: (1, 1, r_tile, 128) -> pure full-block, lane/sublane-dense copy.
    s0_ref[...] = x0_ref[...]
    s1_ref[...] = x1_ref[...]
    s2_ref[...] = x2_ref[...]


def _choose_row_tile(R: int, N: int, itemsize: int) -> int:
    """Rows (of 128 lanes) per grid step.

    Targets ~1 MiB per output block per step so per-step overhead (~0.35us)
    is amortized, while 2 * (3 in + 3 out) double-buffered blocks stay well
    under the smallest scoped-VMEM default across v5e/v6e/v7x.
    """
    max_rows = max(8, (((1 << 20) // (_LANES * itemsize)) // 8) * 8)  # 2048 for f32
    if R <= max_rows:
        if N == 1 and R >= 16:
            # v7x has two TensorCores: make at least 2 grid steps on the row axis.
            half = -(-R // 2)
            half = -(-half // 8) * 8  # round up to a multiple of 8
            if half < R:
                return half
        return R  # full extent -> always a legal block shape
    return max_rows


def model_forward(v1):
    """Mirrors PyTorch Model.forward:
       returns (concatenated_tensor, (split0, split1, split2))."""
    N, C, H, W = v1.shape
    assert C == 3, "split([1,1,1], dim=1) requires 3 channels"
    HW = H * W

    # concatenated_tensor == v1 exactly; return it with zero extra HBM traffic.
    concatenated = v1

    if HW % _LANES != 0:
        # TODO(synk): odd spatial sizes (e.g. 7x7) go through XLA slicing; a
        # padded Pallas path would add a full-tensor pad copy and lose anyway.
        splits = tuple(v1[:, c : c + 1] for c in range(3))
        return concatenated, splits

    R = HW // _LANES
    itemsize = jnp.dtype(v1.dtype).itemsize
    r_tile = _choose_row_tile(R, N, itemsize)

    # Free layout plumbing: last dims stay contiguous, no transpose.
    x4d = v1.reshape(N, C, R, _LANES)

    grid = (N, pl.cdiv(R, r_tile))

    def _in_map(c):
        return lambda n, t, c=c: (n, c, t, 0)

    in_spec = lambda c: pl.BlockSpec((1, 1, r_tile, _LANES), _in_map(c))
    out_spec = pl.BlockSpec((1, 1, r_tile, _LANES), lambda n, t: (n, 0, t, 0))
    out_shape = jax.ShapeDtypeStruct((N, 1, R, _LANES), v1.dtype)

    nbytes = v1.size * itemsize
    cost = pl.CostEstimate(flops=0, transcendentals=0, bytes_accessed=2 * nbytes)

    s0, s1, s2 = pl.pallas_call(
        _split3_kernel,
        out_shape=(out_shape, out_shape, out_shape),
        grid=grid,
        in_specs=[in_spec(0), in_spec(1), in_spec(2)],
        out_specs=(out_spec, out_spec, out_spec),
        compiler_params=pltpu.CompilerParams(
            dimension_semantics=("parallel", "parallel"),
            vmem_limit_bytes=32 << 20,
        ),
        cost_estimate=cost,
    )(x4d, x4d, x4d)

    s0 = s0.reshape(N, 1, H, W)
    s1 = s1.reshape(N, 1, H, W)
    s2 = s2.reshape(N, 1, H, W)

    return concatenated, (s0, s1, s2)


if __name__ == "__main__":
    key = jax.random.PRNGKey(0)
    # split([1,1,1], dim=1) implies 3 channels
    x = jax.random.normal(key, (2, 3, 16, 16), dtype=jnp.float32)

    cat, (s0, s1, s2) = model_forward(x)
    jax.block_until_ready((cat, s0, s1, s2))

    # sanity checks against reference semantics
    assert jnp.array_equal(cat, x)
    assert jnp.array_equal(s0, x[:, 0:1])
    assert jnp.array_equal(s1, x[:, 1:2])
    assert jnp.array_equal(s2, x[:, 2:3])

    print("KERNEL_OK")
</pallas_src>

<mosaic_0001>
module attributes {stable_mosaic.version = 11 : i64} {
  func.func @_split3_kernel(%arg0: i32, %arg1: i32, %arg2: memref<1x1x2x128xf32, #tpu.memory_space<vmem>>, %arg3: memref<1x1x2x128xf32, #tpu.memory_space<vmem>>, %arg4: memref<1x1x2x128xf32, #tpu.memory_space<vmem>>, %arg5: memref<1x1x2x128xf32, #tpu.memory_space<vmem>>, %arg6: memref<1x1x2x128xf32, #tpu.memory_space<vmem>>, %arg7: memref<1x1x2x128xf32, #tpu.memory_space<vmem>>) attributes {dimension_semantics = [#tpu.dimension_semantics<parallel>, #tpu.dimension_semantics<parallel>], iteration_bounds = array<i64: 2, 1>, scalar_prefetch = 0 : i64, scratch_operands = 0 : i64, tpu.core_type = #tpu.core_type<tc>, window_params = [{transform_indices = @transform_0, window_bounds = array<i64: 1, 1, 2, 128>}, {transform_indices = @transform_1, window_bounds = array<i64: 1, 1, 2, 128>}, {transform_indices = @transform_2, window_bounds = array<i64: 1, 1, 2, 128>}, {transform_indices = @transform_3, window_bounds = array<i64: 1, 1, 2, 128>}, {transform_indices = @transform_4, window_bounds = array<i64: 1, 1, 2, 128>}, {transform_indices = @transform_5, window_bounds = array<i64: 1, 1, 2, 128>}]} {
    %c0 = arith.constant 0 : index
    %c0_0 = arith.constant 0 : index
    %c0_1 = arith.constant 0 : index
    %c0_2 = arith.constant 0 : index
    %0 = vector.load %arg2[%c0, %c0_0, %c0_1, %c0_2] : memref<1x1x2x128xf32, #tpu.memory_space<vmem>>, vector<1x1x2x128xf32>
    %c0_3 = arith.constant 0 : index
    %c0_4 = arith.constant 0 : index
    %c0_5 = arith.constant 0 : index
    %c0_6 = arith.constant 0 : index
    %1 = vector.load %arg5[%c0_3, %c0_4, %c0_5, %c0_6] : memref<1x1x2x128xf32, #tpu.memory_space<vmem>>, vector<1x1x2x128xf32>
    tpu.vector_store %arg5[%c0_3, %c0_4, %c0_5, %c0_6], %0 {strides = array<i32>} : memref<1x1x2x128xf32, #tpu.memory_space<vmem>>, vector<1x1x2x128xf32>,
    %c0_7 = arith.constant 0 : index
    %c0_8 = arith.constant 0 : index
    %c0_9 = arith.constant 0 : index
    %c0_10 = arith.constant 0 : index
    %2 = vector.load %arg3[%c0_7, %c0_8, %c0_9, %c0_10] : memref<1x1x2x128xf32, #tpu.memory_space<vmem>>, vector<1x1x2x128xf32>
    %c0_11 = arith.constant 0 : index
    %c0_12 = arith.constant 0 : index
    %c0_13 = arith.constant 0 : index
    %c0_14 = arith.constant 0 : index
    %3 = vector.load %arg6[%c0_11, %c0_12, %c0_13, %c0_14] : memref<1x1x2x128xf32, #tpu.memory_space<vmem>>, vector<1x1x2x128xf32>
    tpu.vector_store %arg6[%c0_11, %c0_12, %c0_13, %c0_14], %2 {strides = array<i32>} : memref<1x1x2x128xf32, #tpu.memory_space<vmem>>, vector<1x1x2x128xf32>,
    %c0_15 = arith.constant 0 : index
    %c0_16 = arith.constant 0 : index
    %c0_17 = arith.constant 0 : index
    %c0_18 = arith.constant 0 : index
    %4 = vector.load %arg4[%c0_15, %c0_16, %c0_17, %c0_18] : memref<1x1x2x128xf32, #tpu.memory_space<vmem>>, vector<1x1x2x128xf32>
    %c0_19 = arith.constant 0 : index
    %c0_20 = arith.constant 0 : index
    %c0_21 = arith.constant 0 : index
    %c0_22 = arith.constant 0 : index
    %5 = vector.load %arg7[%c0_19, %c0_20, %c0_21, %c0_22] : memref<1x1x2x128xf32, #tpu.memory_space<vmem>>, vector<1x1x2x128xf32>
    tpu.vector_store %arg7[%c0_19, %c0_20, %c0_21, %c0_22], %4 {strides = array<i32>} : memref<1x1x2x128xf32, #tpu.memory_space<vmem>>, vector<1x1x2x128xf32>,
    return
  }
  func.func @transform_0(%arg0: i32, %arg1: i32) -> (i32, i32, i32, i32) {
    %c0_i32 = arith.constant 0 : i32
    %c0_i32_0 = arith.constant 0 : i32
    %c0_i32_1 = arith.constant 0 : i32
    return %arg0, %c0_i32, %arg1, %c0_i32_0 : i32, i32, i32, i32
  }
  func.func @transform_1(%arg0: i32, %arg1: i32) -> (i32, i32, i32, i32) {
    %c1_i32 = arith.constant 1 : i32
    %c0_i32 = arith.constant 0 : i32
    %c0_i32_0 = arith.constant 0 : i32
    return %arg0, %c1_i32, %arg1, %c0_i32 : i32, i32, i32, i32
  }
  func.func @transform_2(%arg0: i32, %arg1: i32) -> (i32, i32, i32, i32) {
    %c2_i32 = arith.constant 2 : i32
    %c0_i32 = arith.constant 0 : i32
    %c0_i32_0 = arith.constant 0 : i32
    return %arg0, %c2_i32, %arg1, %c0_i32 : i32, i32, i32, i32
  }
  func.func @transform_3(%arg0: i32, %arg1: i32) -> (i32, i32, i32, i32) {
    %c0_i32 = arith.constant 0 : i32
    %c0_i32_0 = arith.constant 0 : i32
    %c0_i32_1 = arith.constant 0 : i32
    return %arg0, %c0_i32, %arg1, %c0_i32_0 : i32, i32, i32, i32
  }
  func.func @transform_4(%arg0: i32, %arg1: i32) -> (i32, i32, i32, i32) {
    %c0_i32 = arith.constant 0 : i32
    %c0_i32_0 = arith.constant 0 : i32
    %c0_i32_1 = arith.constant 0 : i32
    return %arg0, %c0_i32, %arg1, %c0_i32_0 : i32, i32, i32, i32
  }
  func.func @transform_5(%arg0: i32, %arg1: i32) -> (i32, i32, i32, i32) {
    %c0_i32 = arith.constant 0 : i32
    %c0_i32_0 = arith.constant 0 : i32
    %c0_i32_1 = arith.constant 0 : i32
    return %arg0, %c0_i32, %arg1, %c0_i32_0 : i32, i32, i32, i32
  }
}

</mosaic_0001>

<bundles_post_ra>
// kernel: tpu_custom_call.1
= control target key start
LH: loop header
LB: loop body
LE: loop exit
PB: predicated region body
PF: predicated region fallthrough
CT: control target
= control target key end

     0   :  { %s1244_s0 = inlined_call_operand.hbm [shape: f32[2,3,2,128], index: 0, kind: input, shape index: {}]   ;;  %s1245_s1 = inlined_call_operand.hbm [shape: f32[2,3,2,128], index: 1, kind: input, shape index: {}]   ;;  %s1246_s2 = inlined_call_operand.hbm [shape: f32[2,3,2,128], index: 2, kind: input, shape index: {}]   ;;  %s1247_s3 = inlined_call_operand.hbm [shape: f32[2,1,2,128], index: 3, kind: output, shape index: {0}]   ;;  %s1248_s4 = inlined_call_operand.hbm [shape: f32[2,1,2,128], index: 4, kind: output, shape index: {1}]   ;;  %s1249_s5 = inlined_call_operand.hbm [shape: f32[2,1,2,128], index: 5, kind: output, shape index: {2}]  }
   0x1   :  { %1254 = sst [smem:[#allocation19_spill]] %s1244_s0 }
   0x2   :  { %1255 = sst [smem:[#allocation20_spill]] %s1245_s1 }
   0x3   :  { %11 = vsyncpa [#allocation3], 0 }
   0x4   :  { %13 = vsyncpa [#allocation3 + $0x1], 0 }
   0x5   :  { %14 = vsyncpa [#allocation6], 0 }
   0x6   :  { %16 = vsyncpa [#allocation6 + $0x1], 0 }
   0x7   :  { %17 = vsyncpa [#allocation4], 0 }
   0x8   :  { %19 = vsyncpa [#allocation4 + $0x1], 0 }
   0x9   :  { %20 = vsyncpa [#allocation10], 0 }
   0xa   :  { %22 = vsyncpa [#allocation10 + $0x1], 0  ;;  %s985_s18 = smov 0   ;;  %s987_s19 = smov 0  }
   0xb   :  { %s989_s20 = smov 0   ;;  %s991_s21 = smov 0  }
   0xc   :  { %s993_s22 = smov 0   ;;  %s995_s23 = smov 0  }
   0xd LB: > { %1256 = sst [smem:[#allocation16_spill]] %s943_s22  ;;  %s1016_s24 = sadd.s32 4294967295, %s947_s23   ;;  %s947_s23 = sphi %s995_s23, %s28_s23   ;;  %s943_s22 = sphi %s993_s22, %s1271_s22   ;;  %s939_s21 = sphi %s991_s21, %s1270_s21   ;;  %s935_s20 = sphi %s989_s20, %s1274_s20   ;;  %s931_s19 = sphi %s987_s19, %s1273_s19   ;;  %s927_s18 = sphi %s985_s18, %s1272_s18  }
   0xe   : > { %s1250_s25 = sadd.s32 4294967294, %s947_s23   ;;  %s40_s26 = sadd.s32 1, %s943_s22 }
   0xf   : > { %s49_s27 = sadd.s32 1, %s935_s20  ;;  %p42_p0 = scmp.ge.s32.totalorder %s40_s26, 2 }
  0x10   : > { %p56_p1 = scmp.ne.s32.totalorder %s935_s20, %s931_s19  ;;  %p57_p2 = scmp.eq.s32.totalorder %s947_s23, 0 }
  0x11   : > { %p62_p3 = scmp.ne.s32.totalorder %s931_s19, %s927_s18  ;;  %s1276_s26 = smov (%p42_p0, %s40_s26), 0 }
  0x12   : > { %1257 = sst [smem:[#allocation17_spill]] %s1276_s26  ;;  %p1028_p4 = por %p57_p2, %p56_p1 }
  0x13   : > { %p63_p5 = scmp.eq.s32.totalorder %s1016_s24, 0  ;;  %s44_s29 = ssub.s32 %s943_s22, %s1276_s26 }
  0x14   : > { %p144_p6 = scmp.eq.s32.totalorder %s1016_s24, 1  ;;  %p47_p7 = scmp.eq.s32.totalorder %s44_s29, 0 }
  0x15   : > { %p1036_p8 = por %p63_p5, %p62_p3  ;;  %p150_p10 = scmp.eq.s32.totalorder %s1250_s25, 1 }
  0x16   : > { %p1040_p9 = por %p144_p6, %p56_p1  ;;  %p616_p12 = scmp.ge.s32.totalorder %s947_s23, 2 }
  0x17   : > { %s1047_s7 = scalar_select %p47_p7, %s935_s20, %s49_s27  }
  0x18   : > { %p1049_p11 = por %p150_p10, %p62_p3  ;;  %p671_p13 = scmp.lt.s32.totalorder %s947_s23, 2 }
  0x19   : > { %1261 = sst [smem:[#allocation18_spill]] %s1047_s7  ;;  %s1251_s9 = sand.u32 1, %s935_s20  }
  0x1a   : > { %s1058_s10 = sshll.u32 %s1251_s9, 1  ;;  %s1061_s11 = smul.u32 96, %s943_s22 }
  0x1b   : > { %p1065_p0 = pnand %p671_p13, %p1028_p4  ;;  %s246_s13 = sand.u32 1, %s947_s23  }
  0x1c   : > { %s1264_s1 = sld [smem:[#allocation20_spill]]  ;;  %s250_s27 = scalar_lea.vmem [#allocation5], %s1058_s10 }
  0x1d   : > { %s260_s29 = sshll.u32 %s250_s27, 4  ;;  %p623_p1 = scmp.ge.s32.totalorder %s947_s23, 1  ;;  %s261_s29 = int_to_ptr.vmem [resolvable:$true] %s260_s29 }
  0x1e   : > { %s1076_s25 = scalar_lea.sflag [#allocation6], %s246_s13  ;;  %p723_p2 = pneg %p1065_p0 }
  0x1f   : > { %s734_s28 = scalar_lea.vmem %s261_s29, 32  ;;  %s949_s9 = smov [#allocation5]  }
  0x20   : > { %p735_p3 = scmp.ne.s32.totalorder %s261_s29, %s734_s28  ;;  %s739_s26 = sshll.u32 %s949_s9, 4  ;;  %s740_s26 = int_to_ptr.vmem [resolvable:$false] %s739_s26 }
  0x21   : > { %s741_s14 = scalar_lea.vmem %s740_s26, 64  ;;  %p742_p6 = scmp.lt.s32.totalorder %s261_s29, %s740_s26 }
  0x22   : > { %s481_s16 = scalar_lea.hbm %s1264_s1, %s1061_s11  ;;  %p737_p4 = pnand %p735_p3, %p723_p2 }
  0x23   : > { %s482_s17 = scalar_lea.hbm %s481_s16, 32  ;;  %p743_p7 = scmp.lt.s32.totalorder %s741_s14, %s734_s28 }
  0x24   : > { %p738_p5 = pneg %p737_p4 }
  0x25   : > { %p744_p10 = por %p743_p7, %p742_p6 }
  0x27   : > { %p745_p13 = pnand %p744_p10, %p738_p5 }
  0x29   : > { %748 = shalt.err (!%p745_p13)
}
  0x2a   : > { %657 = dma.hbm_to_vmem [thread:$0]  (!%p1065_p0), %s482_s17, 32, %s261_s29, %s1076_s25  }
  0x2b   : > { %p286_p3 = scmp.lt.s32.totalorder %s947_s23, 3  ;;  %s1266_s0 = sld [smem:[#allocation19_spill]] }
  0x2c   : > { %s230_s16 = scalar_lea.vmem [#allocation2], %s1058_s10  ;;  %s1267_s28 = sand.u32 1, %s935_s20  }
  0x2d   : > { %p1089_p4 = pnand %p623_p1, %p286_p3  ;;  %s239_s27 = sshll.u32 %s230_s16, 4  ;;  %s240_s27 = int_to_ptr.vmem [resolvable:$true] %s239_s27 }
  0x2e   : > { %s227_s14 = scalar_lea.sflag [#allocation3], %s1267_s28  ;;  %s763_s1 = scalar_lea.vmem %s240_s27, 32 }
  0x2f   : > { %p764_p5 = scmp.ne.s32.totalorder %s240_s27, %s763_s1  ;;  %s950_s17 = smov [#allocation2]  }
  0x30   : > { %s768_s29 = sshll.u32 %s950_s17, 4  ;;  %s769_s29 = int_to_ptr.vmem [resolvable:$false] %s768_s29 }
  0x31   : > { %s237_s15 = scalar_lea.hbm %s1266_s0, %s1061_s11  ;;  %p766_p6 = pnand %p764_p5, %p723_p2 }
  0x32   : > { %s770_s22 = scalar_lea.vmem %s769_s29, 64  ;;  %p771_p1 = scmp.lt.s32.totalorder %s240_s27, %s769_s29 }
  0x33   : > { %p767_p7 = pneg %p766_p6  ;;  %p772_p10 = scmp.lt.s32.totalorder %s770_s22, %s763_s1 }
  0x35   : > { %p773_p13 = por %p772_p10, %p771_p1 }
  0x37   : > { %p774_p3 = pnand %p773_p13, %p767_p7 }
  0x39   : > { %777 = shalt.err (!%p774_p3)
}
  0x3a   : > { %654 = dma.hbm_to_vmem [thread:$0]  (!%p1065_p0), %s237_s15, 32, %s240_s27, %s227_s14  }
  0x3b   : > { %s489_s16 = scalar_lea.hbm %s1246_s2, %s1061_s11  ;;  %s271_s28 = scalar_lea.vmem [#allocation7], %s1058_s10 }
  0x3c   : > { %s281_s0 = sshll.u32 %s271_s28, 4  ;;  %s490_s17 = scalar_lea.hbm %s489_s16, 64  ;;  %s282_s0 = int_to_ptr.vmem [resolvable:$true] %s281_s0 }
  0x3d   : > { %s791_s7 = scalar_lea.vmem %s282_s0, 32  ;;  %s951_s1 = smov [#allocation7]  }
  0x3e   : > { %p792_p5 = scmp.ne.s32.totalorder %s282_s0, %s791_s7  ;;  %s796_s22 = sshll.u32 %s951_s1, 4  ;;  %s797_s22 = int_to_ptr.vmem [resolvable:$false] %s796_s22 }
  0x3f   : > { %s798_s29 = scalar_lea.vmem %s797_s22, 64  ;;  %p799_p1 = scmp.lt.s32.totalorder %s282_s0, %s797_s22 }
  0x40   : > { %p794_p6 = pnand %p792_p5, %p723_p2  ;;  %p800_p10 = scmp.lt.s32.totalorder %s798_s29, %s791_s7 }
  0x42   : > { %p795_p7 = pneg %p794_p6  ;;  %p801_p13 = por %p800_p10, %p799_p1 }
  0x44   : > { %p802_p3 = pnand %p801_p13, %p795_p7 }
  0x46   : > { %805 = shalt.err (!%p802_p3)
}
  0x47   : > { %660 = dma.hbm_to_vmem [thread:$0]  (!%p1065_p0), %s490_s17, 32, %s282_s0, %s1076_s25  }
  0x48   : > { %290 = sbr.rel (%p1089_p4) target bundleno = 151 (0x97), region = 32  ;;  %s1119_s10 = sand.u32 (!%p1089_p4), 1, %s931_s19  }
  0x49   : > { %s624_s11 = sshll.u32 (!%p1089_p4), %s1119_s10, 1  ;;  %s293_s15 = scalar_lea.sflag (!%p1089_p4), [#allocation3], %s1119_s10 }
  0x4a   : > { %s296_s27 = scalar_lea.vmem (!%p1089_p4), [#allocation2], %s624_s11 }
  0x4d   : > { %910 = dma.done.wait (%p1036_p8), %s293_s15, 32  }
  0x4e   : > { %912 = vsyncadd (%p1036_p8), %s293_s15, 4294967264  ;;  %s301_s0 = sand.u32 1, %s1016_s24   ;;  %s305_s7 = scalar_lea.vmem [#allocation5], %s624_s11 }
  0x4f   : > { %s302_s25 = scalar_lea.sflag [#allocation6], %s301_s0 }
  0x50   : > { %914 = dma.done.wait (%p1036_p8), %s302_s25, 64  }
  0x51   : > { %916 = vsyncadd (%p1036_p8), %s302_s25, 4294967232  ;;  %s353_s12 = scalar_lea.vmem [#allocation9], %s624_s11  ;;  %s346_s14 = scalar_lea.vmem [#allocation8], %s624_s11  ;;  %v363_v0 = vld [vmem:[%s305_s7] sm:$0x3] }
  0x52   : > { %s406_s9 = sshll.u32 %s353_s12, 4  ;;  %s392_s26 = sshll.u32 %s346_s14, 4  ;;  %v361_v1 = vld [vmem:[%s296_s27] sm:$0x3]  ;;  %364 = vst [vmem:[%s353_s12] sm:$0x3] %v363_v0  ;;  %s1132_s9 = int_to_ptr.vmem [resolvable:$true] %s406_s9  ;;  %s1140_s26 = int_to_ptr.vmem [resolvable:$true] %s392_s26 }
  0x53   : > { %s360_s13 = scalar_lea.vmem [#allocation11], %s624_s11  ;;  %s633_s28 = sshll.u32 %s939_s21, 5  ;;  %362 = vst [vmem:[%s346_s14] sm:$0x3] %v361_v1 }
  0x54   : > { %s420_s16 = sshll.u32 %s360_s13, 4  ;;  %s1138_s1 = scalar_lea.hbm %s1248_s4, %s633_s28  ;;  %s1147_s16 = int_to_ptr.vmem [resolvable:$true] %s420_s16 }
  0x55   : > { %s314_s30 = scalar_lea.vmem [#allocation7], %s624_s11  ;;  %s1145_s15 = scalar_lea.hbm %s1247_s3, %s633_s28 }
  0x56   : > { %v365_v2 = vld [vmem:[%s314_s30] sm:$0x3]  ;;  %s1152_s7 = scalar_lea.hbm %s1249_s5, %s633_s28  ;;  %s1154_s27 = scalar_lea.sflag [#allocation10], %s301_s0 }
  0x57   : > { %366 = vst [vmem:[%s360_s13] sm:$0x3] %v365_v2  ;;  %s807_s11 = scalar_lea.vmem %s1132_s9, 32  ;;  %s952_s24 = smov [#allocation9]  }
  0x58   : > { %p808_p8 = scmp.ne.s32.totalorder %s1132_s9, %s807_s11  ;;  %s811_s17 = sshll.u32 %s952_s24, 4  ;;  %s812_s17 = int_to_ptr.vmem [resolvable:$false] %s811_s17 }
  0x59   : > { %s813_s12 = scalar_lea.vmem %s812_s17, 64  ;;  %p814_p4 = scmp.lt.s32.totalorder %s1132_s9, %s812_s17 }
  0x5a   : > { %p809_p0 = pnand %p808_p8, %p1040_p9  ;;  %p815_p5 = scmp.lt.s32.totalorder %s813_s12, %s807_s11 }
  0x5c   : > { %p810_p2 = pneg %p809_p0  ;;  %p816_p6 = por %p815_p5, %p814_p4 }
  0x5e   : > { %p817_p7 = pnand %p816_p6, %p810_p2 }
  0x60   : > { %820 = shalt.err (!%p817_p7)
}
  0x61   : > { %s821_s0 = scalar_lea.hbm %s1138_s1, 32  ;;  %s825_s28 = scalar_lea.hbm %s1248_s4, 64 }
  0x62   : > { %p822_p1 = scmp.ne.s32.totalorder %s1138_s1, %s821_s0  ;;  %p826_p3 = scmp.lt.s32.totalorder %s1138_s1, %s1248_s4 }
  0x63   : > { %p827_p8 = scmp.lt.s32.totalorder %s825_s28, %s821_s0 }
  0x64   : > { %p823_p10 = pnand %p822_p1, %p1040_p9 }
  0x65   : > { %p828_p0 = por %p827_p8, %p826_p3 }
  0x66   : > { %p824_p13 = pneg %p823_p10 }
  0x68   : > { %p829_p2 = pnand %p828_p0, %p824_p13 }
  0x6a   : > { %832 = shalt.err (!%p829_p2)
}
  0x6b   : > { %646 = dma.vmem_to_hbm [thread:$0]  (%p1040_p9), %s1132_s9, 32, %s1138_s1, %s1154_s27  }
  0x6c   : > { %s368_s29 = scalar_lea.sflag [#allocation4], %s1119_s10  ;;  %s833_s21 = scalar_lea.vmem %s1140_s26, 32 }
  0x6d   : > { %p834_p4 = scmp.ne.s32.totalorder %s1140_s26, %s833_s21  ;;  %s953_s25 = smov [#allocation8]  }
  0x6e   : > { %s837_s11 = sshll.u32 %s953_s25, 4  ;;  %s838_s11 = int_to_ptr.vmem [resolvable:$false] %s837_s11 }
  0x6f   : > { %p835_p5 = pnand %p834_p4, %p1040_p9  ;;  %s839_s24 = scalar_lea.vmem %s838_s11, 64 }
  0x70   : > { %p840_p7 = scmp.lt.s32.totalorder %s1140_s26, %s838_s11  ;;  %p841_p1 = scmp.lt.s32.totalorder %s839_s24, %s833_s21 }
  0x71   : > { %p836_p6 = pneg %p835_p5 }
  0x72   : > { %p842_p10 = por %p841_p1, %p840_p7 }
  0x74   : > { %p843_p13 = pnand %p842_p10, %p836_p6 }
  0x76   : > { %846 = shalt.err (!%p843_p13)
}
  0x77   : > { %s847_s9 = scalar_lea.hbm %s1145_s15, 32  ;;  %s851_s17 = scalar_lea.hbm %s1247_s3, 64 }
  0x78   : > { %p848_p3 = scmp.ne.s32.totalorder %s1145_s15, %s847_s9  ;;  %p852_p2 = scmp.lt.s32.totalorder %s1145_s15, %s1247_s3 }
  0x79   : > { %p853_p4 = scmp.lt.s32.totalorder %s851_s17, %s847_s9 }
  0x7a   : > { %p849_p8 = pnand %p848_p3, %p1040_p9 }
  0x7b   : > { %p854_p5 = por %p853_p4, %p852_p2 }
  0x7c   : > { %p850_p0 = pneg %p849_p8 }
  0x7e   : > { %p855_p6 = pnand %p854_p5, %p850_p0 }
  0x80   : > { %858 = shalt.err (!%p855_p6)
}
  0x81   : > { %645 = dma.vmem_to_hbm [thread:$0]  (%p1040_p9), %s1140_s26, 32, %s1145_s15, %s368_s29  }
  0x82   : > { %s859_s14 = scalar_lea.vmem %s1147_s16, 32  ;;  %s954_s13 = smov [#allocation11]  }
  0x83   : > { %p860_p7 = scmp.ne.s32.totalorder %s1147_s16, %s859_s14  ;;  %s863_s28 = sshll.u32 %s954_s13, 4  ;;  %s864_s28 = int_to_ptr.vmem [resolvable:$false] %s863_s28 }
  0x84   : > { %s865_s30 = scalar_lea.vmem %s864_s28, 64  ;;  %p866_p13 = scmp.lt.s32.totalorder %s1147_s16, %s864_s28 }
  0x85   : > { %p861_p1 = pnand %p860_p7, %p1040_p9  ;;  %p867_p3 = scmp.lt.s32.totalorder %s865_s30, %s859_s14 }
  0x87   : > { %p862_p10 = pneg %p861_p1  ;;  %p868_p8 = por %p867_p3, %p866_p13 }
  0x89   : > { %p869_p0 = pnand %p868_p8, %p862_p10 }
  0x8b   : > { %872 = shalt.err (!%p869_p0)
}
  0x8c   : > { %s873_s22 = scalar_lea.hbm %s1152_s7, 32  ;;  %s877_s29 = scalar_lea.hbm %s1249_s5, 64 }
  0x8d   : > { %p874_p2 = scmp.ne.s32.totalorder %s1152_s7, %s873_s22  ;;  %p878_p6 = scmp.lt.s32.totalorder %s1152_s7, %s1249_s5 }
  0x8e   : > { %p879_p7 = scmp.lt.s32.totalorder %s877_s29, %s873_s22 }
  0x8f   : > { %p875_p4 = pnand %p874_p2, %p1040_p9 }
  0x90   : > { %p880_p1 = por %p879_p7, %p878_p6 }
  0x91   : > { %p876_p5 = pneg %p875_p4 }
  0x93   : > { %p881_p10 = pnand %p880_p1, %p876_p5 }
  0x95   : > { %884 = shalt.err (!%p881_p10)
}
  0x96   : > { %647 = dma.vmem_to_hbm [thread:$0]  (%p1040_p9), %s1147_s16, 32, %s1152_s7, %s1154_s27  }
  0x97 PF: > { %s432_s11 = sand.u32 1, %s927_s18   ;;  %p662_p13 = pnand %p616_p12, %p1049_p11 }
  0x98   : > { %s433_s24 = scalar_lea.sflag [#allocation4], %s432_s11 }
  0x99   : > { %p663_p3 = pneg %p662_p13 }
  0x9b   : > { %918 = dma.done.wait (%p663_p3), %s433_s24, 32  }
  0x9c   : > { %920 = vsyncadd (%p663_p3), %s433_s24, 4294967264  ;;  %s1268_s9 = sadd.s32 4294967294, %s947_s23  }
  0x9d   : > { %s441_s10 = sand.u32 1, %s1268_s9  }
  0x9e   : > { %s442_s6 = scalar_lea.sflag [#allocation10], %s441_s10 }
  0x9f   : > { %922 = dma.done.wait (%p663_p3), %s442_s6, 64  }
  0xa0   : > { %924 = vsyncadd (%p663_p3), %s442_s6, 4294967232  ;;  %s28_s23 = sadd.s32 1, %s947_s23   ;;  %s1269_s16 = sld [smem:[#allocation18_spill]] }
  0xa1   : > { %p25_p9 = scmp.ge.s32.totalorder %s28_s23, 4   ;;  %s1270_s21 = sld [smem:[#allocation16_spill]] }
  0xa2   : > { %s1271_s22 = sld [smem:[#allocation17_spill]]  ;;  %s1272_s18 = smov %s931_s19 }
  0xa3   : > { %s1273_s19 = smov %s935_s20  ;;  %27 = sbr.rel (!%p25_p9) target bundleno = 13 (0xd), region = 133 }
  0xa6   : > { %s1274_s20 = smov %s1269_s16 }
  0xa8   :  { %456 = vsyncpa [#allocation3], 1 }
  0xa9   :  { %458 = vsyncpa [#allocation3 + $0x1], 1 }
  0xaa   :  { %459 = vsyncpa [#allocation6], 1 }
  0xab   :  { %461 = vsyncpa [#allocation6 + $0x1], 1 }
  0xac   :  { %462 = vsyncpa [#allocation4], 1 }
  0xad   :  { %464 = vsyncpa [#allocation4 + $0x1], 1 }
  0xae   :  { %465 = vsyncpa [#allocation10], 1 }
  0xaf   :  { %467 = vsyncpa [#allocation10 + $0x1], 1 }

</bundles_post_ra>
